<compile_context>
chip_gen: v7x
topology: tpu7x:2x2x1
jax: 0.10.0
libtpu: 0.0.40
codegen_flags: <defaults>
</compile_context>

<pallas_src>
import functools
import math

import jax
import jax.numpy as jnp
from jax.experimental import pallas as pl
from jax.experimental.pallas import tpu as pltpu

LANE = 128


def _round_up(x, m):
    return ((x + m - 1) // m) * m


@functools.lru_cache(maxsize=None)
def _vmem_cap_bytes():
    """Per-chip VMEM budget cap: ~3/4 of capacity (48 MiB on v7x, 96 MiB on v5e/v6e)."""
    cap = 64 * 2 ** 20
    try:
        info = pltpu.get_tpu_info()
        cap = int(getattr(info, "vmem_capacity_bytes", cap) or cap)
    except Exception:
        pass
    return int(min(100 * 2 ** 20, max(32 * 2 ** 20, (cap * 3) // 4)))


def _vmem_limit(nbytes_est):
    return int(min(_vmem_cap_bytes(), max(16 * 2 ** 20, int(1.5 * nbytes_est))))


def _choose_row_tile(m, max_tm=512):
    """Pick (tm, padded_m) for a row-tiled GEMM/pool over m rows.

    Targets tiles up to 512 rows (~85% of HBM roofline per measured data) while
    keeping the parallel grid length >= 2 so v7x's 2 TensorCores both get work.
    Tiles are multiples of 16 so bf16 blocks stay sublane-aligned.
    """
    mp8 = _round_up(m, 8)
    if mp8 <= 16:
        return mp8, mp8
    tm = min(max_tm, _round_up((mp8 + 1) // 2, 16))
    mp = _round_up(mp8, tm)
    return tm, mp


# ----------------------------------------------------------------------------
# Pallas kernels
# ----------------------------------------------------------------------------
@functools.lru_cache(maxsize=None)
def _make_gemm_kernel(has_residual, apply_relu):
    """Fused (patches @ W) * scale + shift [+ residual] [-> relu] kernel."""

    def kernel(x_ref, w_ref, scale_ref, shift_ref, *rest):
        if has_residual:
            res_ref, o_ref = rest
        else:
            (o_ref,) = rest
        acc = jnp.dot(x_ref[...], w_ref[...], preferred_element_type=jnp.float32)
        y = acc * scale_ref[...] + shift_ref[...]
        if has_residual:
            y = y + res_ref[...].astype(jnp.float32)
        if apply_relu:
            y = jnp.maximum(y, 0.0)
        o_ref[...] = y.astype(o_ref.dtype)

    return kernel


def _maxpool_kernel(x_ref, o_ref):
    acc = x_ref[0]
    for k in range(1, x_ref.shape[0]):
        acc = jnp.maximum(acc, x_ref[k])
    o_ref[...] = acc


def _gemm_call(x_bf16, w_bf16, scale, shift, residual, *, relu, tm, out_dtype):
    """y[mp, nc] = epilogue(x[mp, k] @ w[k, nc]); gridded (parallel) over row tiles."""
    mp, k = x_bf16.shape
    _, nc = w_bf16.shape
    assert mp % tm == 0
    grid = (mp // tm,)

    in_specs = [
        pl.BlockSpec((tm, k), lambda i: (i, 0)),   # activation tile (pipelined)
        pl.BlockSpec((k, nc), lambda i: (0, 0)),   # packed weights stay VMEM-resident
        pl.BlockSpec((1, nc), lambda i: (0, 0)),   # folded-BN scale
        pl.BlockSpec((1, nc), lambda i: (0, 0)),   # folded-BN shift / linear bias
    ]
    args = [x_bf16, w_bf16, scale, shift]
    if residual is not None:
        in_specs.append(pl.BlockSpec((tm, nc), lambda i: (i, 0)))
        args.append(residual)
    out_spec = pl.BlockSpec((tm, nc), lambda i: (i, 0))

    # VMEM budget: count EVERYTHING (including the constant-index weight/scale/shift)
    # as double-buffered, add 50% headroom, clamp to the per-chip cap.
    out_bytes = jnp.dtype(out_dtype).itemsize
    est = (2 * tm * k * 2) + (2 * k * nc * 2) + (2 * 2 * nc * 4) + (2 * tm * nc * out_bytes)
    if residual is not None:
        est += 2 * tm * nc * 2

    return pl.pallas_call(
        _make_gemm_kernel(residual is not None, relu),
        out_shape=jax.ShapeDtypeStruct((mp, nc), out_dtype),
        grid=grid,
        in_specs=in_specs,
        out_specs=out_spec,
        compiler_params=pltpu.CompilerParams(
            dimension_semantics=("parallel",),
            vmem_limit_bytes=_vmem_limit(est),
        ),
    )(*args)


# ----------------------------------------------------------------------------
# im2col / pooling helpers (shared by the Pallas path and the plain-JAX reference)
# ----------------------------------------------------------------------------
def _im2col(x, kh, kw, stride, pad):
    n, h, w, c = x.shape
    ho = (h + 2 * pad - kh) // stride + 1
    wo = (w + 2 * pad - kw) // stride + 1
    xp = jnp.pad(x, ((0, 0), (pad, pad), (pad, pad), (0, 0)))
    cols = []
    for i in range(kh):
        for j in range(kw):
            cols.append(xp[:, i:i + stride * (ho - 1) + 1:stride,
                           j:j + stride * (wo - 1) + 1:stride, :])
    return jnp.concatenate(cols, axis=-1), ho, wo


def _patch_matrix(x, p):
    """x is bf16 so only bf16 patch bytes ever touch HBM (half the previous traffic)."""
    patches, ho, wo = _im2col(x, p["kh"], p["kw"], p["stride"], p["pad"])
    m = x.shape[0] * ho * wo
    pm = patches.reshape(m, -1)
    k_store = p["w"].shape[0]
    if pm.shape[1] != k_store:  # pad contraction dim up to the packed weight's K
        pm = jnp.pad(pm, ((0, 0), (0, k_store - pm.shape[1])))
    return pm, m, ho, wo


def _pool_windows(x):
    """3x3 stride-2 pad-1 max-pool windows -> [9, N*Ho*Wo, C], (Ho, Wo)."""
    n, h, w, c = x.shape
    kk, s, p = 3, 2, 1
    ho = (h + 2 * p - kk) // s + 1
    wo = (w + 2 * p - kk) // s + 1
    neg = jnp.finfo(x.dtype).min
    xp = jnp.pad(x, ((0, 0), (p, p), (p, p), (0, 0)), constant_values=neg)
    wins = []
    for i in range(kk):
        for j in range(kk):
            wins.append(xp[:, i:i + s * (ho - 1) + 1:s, j:j + s * (wo - 1) + 1:s, :])
    return jnp.stack(wins, axis=0).reshape(kk * kk, n * ho * wo, c), ho, wo


def max_pool_3x3_s2(x):
    """Row-tiled Pallas max over the 9 shifted windows (pipelined, fits VMEM)."""
    n, _, _, c = x.shape
    stacked, ho, wo = _pool_windows(x)          # bf16: [9, m, C]
    m = stacked.shape[1]
    tm, mp = _choose_row_tile(m)
    if mp != m:
        stacked = jnp.pad(stacked, ((0, 0), (0, mp - m), (0, 0)))
    est = (2 * 9 * tm * c * 2) + (2 * tm * c * 2)
    out = pl.pallas_call(
        _maxpool_kernel,
        out_shape=jax.ShapeDtypeStruct((mp, c), x.dtype),
        grid=(mp // tm,),
        in_specs=[pl.BlockSpec((9, tm, c), lambda i: (0, i, 0))],
        out_specs=pl.BlockSpec((tm, c), lambda i: (i, 0)),
        compiler_params=pltpu.CompilerParams(
            dimension_semantics=("parallel",),
            vmem_limit_bytes=_vmem_limit(est),
        ),
    )(stacked)
    return out[:m].reshape(n, ho, wo, c)


# ----------------------------------------------------------------------------
# Layer wrappers around the Pallas GEMM
# ----------------------------------------------------------------------------
def conv_bn_act(x, p, *, relu, residual=None):
    """x: [N,H,W,Cin_store] bf16 -> [N,Ho,Wo,Cout_store] bf16 via one fused Pallas GEMM."""
    pm, m, ho, wo = _patch_matrix(x, p)
    nc = p["c_out_store"]
    tm, mp = _choose_row_tile(m)
    if mp != m:
        pm = jnp.pad(pm, ((0, mp - m), (0, 0)))
    res = None
    if residual is not None:
        res = residual.reshape(m, nc)
        if mp != m:
            res = jnp.pad(res, ((0, mp - m), (0, 0)))
    out = _gemm_call(pm, p["w"], p["scale"], p["shift"], res,
                     relu=relu, tm=tm, out_dtype=jnp.bfloat16)
    return out[:m].reshape(x.shape[0], ho, wo, nc)


def _basic_block_forward(x, blk):
    identity = x
    out = conv_bn_act(x, blk["conv1"], relu=True)
    if "downsample" in blk:
        identity = conv_bn_act(x, blk["downsample"], relu=False)
    return conv_bn_act(out, blk["conv2"], relu=True, residual=identity)


def _exit_forward(x, p, num_classes):
    # TODO(synk): Occam_MultiExitModule exit internals (CAM conv heads / gating, use of y)
    #             are not defined in the spec; each exit here is GAP + Linear -> logits.
    n = x.shape[0]
    feats = jnp.mean(x.astype(jnp.float32), axis=(1, 2))  # global average pool (f32 acc)
    npad = _round_up(n, 8)
    if npad != n:
        feats = jnp.pad(feats, ((0, npad - n), (0, 0)))
    out = _gemm_call(feats.astype(jnp.bfloat16), p["w"], p["scale"], p["shift"],
                     None, relu=False, tm=npad, out_dtype=jnp.float32)
    return out[:n, :num_classes]


def occam_resnet_forward(x_nchw, params, num_classes, y=None):
    """Eval-mode OccamResNet forward; returns dict of per-exit logits."""
    x = jnp.transpose(x_nchw, (0, 2, 3, 1)).astype(jnp.bfloat16)  # NCHW -> NHWC, bf16
    x = conv_bn_act(x, params["conv1"], relu=True)                # conv1 + bn1 + relu
    x = max_pool_3x3_s2(x)                                        # maxpool
    logits = {}
    for i in range(4):
        for blk in params[f"layer{i + 1}"]:
            x = _basic_block_forward(x, blk)
        logits[f"E={i}, logits"] = _exit_forward(x, params["exits"][i], num_classes)
    return logits


# ----------------------------------------------------------------------------
# Parameter construction (random init; frozen eval-mode BN folded to scale/shift)
# ----------------------------------------------------------------------------
def _conv_weight(key, c_out, c_in, k):
    bound = math.sqrt(6.0 / (c_in * k * k))  # He-uniform so activations stay O(1)
    return jax.random.uniform(key, (c_out, c_in, k, k), jnp.float32, -bound, bound)


def _pack_conv_bn(w_oihw, c_in_store, stride, pad):
    """Pack conv weight [Cout,Cin,kh,kw] + fresh frozen BN into GEMM-ready arrays."""
    c_out, c_in, kh, kw = w_oihw.shape
    c_out_store = _round_up(c_out, LANE)
    k_real = kh * kw * c_in_store
    k_store = _round_up(k_real, LANE)
    w = jnp.transpose(w_oihw, (2, 3, 1, 0))  # [kh, kw, Cin, Cout]
    w_full = jnp.zeros((kh, kw, c_in_store, c_out_store), jnp.float32)
    w_full = w_full.at[:, :, :c_in, :c_out].set(w)
    w_mat = jnp.zeros((k_store, c_out_store), jnp.float32)
    w_mat = w_mat.at[:k_real].set(w_full.reshape(k_real, c_out_store))
    # Frozen (eval) BatchNorm folded to per-channel affine. Fresh stats: gamma=1,
    # beta=0, running_mean=0, running_var=1. Padded channels get scale=shift=0.
    eps = 1e-5
    scale = jnp.zeros((1, c_out_store), jnp.float32).at[:, :c_out].set(1.0 / math.sqrt(1.0 + eps))
    shift = jnp.zeros((1, c_out_store), jnp.float32)
    return dict(w=w_mat.astype(jnp.bfloat16), scale=scale, shift=shift,
                kh=kh, kw=kw, stride=stride, pad=pad, c_out_store=c_out_store)


def _make_basic_block(ki, c_in, c_out, stride):
    c_in_store = _round_up(c_in, LANE)
    c_out_store = _round_up(c_out, LANE)
    blk = {
        "conv1": _pack_conv_bn(_conv_weight(next(ki), c_out, c_in, 3), c_in_store, stride, 1),
        "conv2": _pack_conv_bn(_conv_weight(next(ki), c_out, c_out, 3), c_out_store, 1, 1),
    }
    if stride != 1 or c_in != c_out:
        blk["downsample"] = _pack_conv_bn(
            _conv_weight(next(ki), c_out, c_in, 1), c_in_store, stride, 0)
    return blk


def _make_exit(key, c_in, num_classes):
    c_in_store = _round_up(c_in, LANE)
    c_out_store = _round_up(num_classes, LANE)  # lane-dense classifier output, sliced later
    kw_, kb_ = jax.random.split(key)
    bound = 1.0 / math.sqrt(c_in)
    w = jax.random.uniform(kw_, (c_in, num_classes), jnp.float32, -bound, bound)
    b = jax.random.uniform(kb_, (num_classes,), jnp.float32, -bound, bound)
    w_full = jnp.zeros((c_in_store, c_out_store), jnp.float32).at[:c_in, :num_classes].set(w)
    scale = jnp.zeros((1, c_out_store), jnp.float32).at[:, :num_classes].set(1.0)
    shift = jnp.zeros((1, c_out_store), jnp.float32).at[:, :num_classes].set(b)
    return dict(w=w_full.astype(jnp.bfloat16), scale=scale, shift=shift)


def init_occam_resnet18_params(key, nc_in, num_classes, arch="resnet18"):
    assert arch == "resnet18", "only the resnet18 BasicBlock backbone is implemented"
    base_dim = {"resnet18": 64, "resnet50": 256}[arch]
    keys = jax.random.split(key, 32)
    ki = iter(keys)
    params = {}
    # conv1 (7x7, s2, p3): the torch code inits a 3-channel conv and, when nc != 3,
    # copies channel (i % 3) into channel i of an nc-channel conv. Replicate that.
    w3 = _conv_weight(next(ki), 64, 3, 7)
    w1 = w3 if nc_in == 3 else jnp.stack([w3[:, i % 3] for i in range(nc_in)], axis=1)
    params["conv1"] = _pack_conv_bn(w1, c_in_store=nc_in, stride=2, pad=3)
    cfg = [(64, 64, 1), (64, 128, 2), (128, 256, 2), (256, 512, 2)]
    for li, (cin, cout, s) in enumerate(cfg):
        params[f"layer{li + 1}"] = [
            _make_basic_block(ki, cin, cout, s),
            _make_basic_block(ki, cout, cout, 1),
        ]
    params["exits"] = [_make_exit(next(ki), base_dim * 2 ** i, num_classes) for i in range(4)]
    return params


# ----------------------------------------------------------------------------
# Plain-JAX reference (same numerics: bf16 activations, bf16 GEMM operands, f32 acc)
# ----------------------------------------------------------------------------
def _conv_bn_act_ref(x, p, *, relu, residual=None):
    pm, m, ho, wo = _patch_matrix(x, p)
    y = jnp.dot(pm, p["w"], preferred_element_type=jnp.float32)
    y = y * p["scale"] + p["shift"]
    if residual is not None:
        y = y + residual.reshape(m, -1).astype(jnp.float32)
    if relu:
        y = jnp.maximum(y, 0.0)
    return y.astype(jnp.bfloat16).reshape(x.shape[0], ho, wo, p["c_out_store"])


def _max_pool_ref(x):
    n, _, _, c = x.shape
    stacked, ho, wo = _pool_windows(x)
    return jnp.max(stacked, axis=0).reshape(n, ho, wo, c)


def occam_resnet_reference(x_nchw, params, num_classes):
    x = jnp.transpose(x_nchw, (0, 2, 3, 1)).astype(jnp.bfloat16)
    x = _conv_bn_act_ref(x, params["conv1"], relu=True)
    x = _max_pool_ref(x)
    logits = {}
    for i in range(4):
        for blk in params[f"layer{i + 1}"]:
            identity = x
            out = _conv_bn_act_ref(x, blk["conv1"], relu=True)
            if "downsample" in blk:
                identity = _conv_bn_act_ref(x, blk["downsample"], relu=False)
            x = _conv_bn_act_ref(out, blk["conv2"], relu=True, residual=identity)
        p = params["exits"][i]
        feats = jnp.mean(x.astype(jnp.float32), axis=(1, 2))
        yl = jnp.dot(feats.astype(jnp.bfloat16), p["w"], preferred_element_type=jnp.float32)
        yl = yl * p["scale"] + p["shift"]
        logits[f"E={i}, logits"] = yl[:, :num_classes]
    return logits


# ----------------------------------------------------------------------------
if __name__ == "__main__":
    batch, nc_in, hw = 2, 4, 16
    num_classes = 8
    hparams = {"arch": "resnet18", "pretrain": None, "resnet_dropout": 0.0}

    key = jax.random.PRNGKey(0)
    kx, kp = jax.random.split(key)
    x = jax.random.normal(kx, (batch, nc_in, hw, hw), jnp.float32)
    params = init_occam_resnet18_params(kp, nc_in, num_classes, arch=hparams["arch"])

    out = occam_resnet_forward(x, params, num_classes)
    out = jax.block_until_ready(out)

    ref = occam_resnet_reference(x, params, num_classes)
    for i in range(4):
        name = f"E={i}, logits"
        assert out[name].shape == (batch, num_classes), out[name].shape
        assert bool(jnp.all(jnp.isfinite(out[name]))), f"non-finite logits at exit {i}"
        # bf16 activations: tolerance slightly wider than the f32-activation version.
        assert jnp.allclose(out[name], ref[name], atol=1e-1, rtol=5e-2), (
            f"mismatch at exit {i}:\n{out[name]}\nvs\n{ref[name]}")

    print("KERNEL_OK")
</pallas_src>

<mosaic_0001>
module attributes {stable_mosaic.version = 11 : i64} {
  func.func @kernel(%arg0: i32, %arg1: memref<64x256xbf16, #tpu.memory_space<vmem>>, %arg2: memref<256x128xbf16, #tpu.memory_space<vmem>>, %arg3: memref<1x128xf32, #tpu.memory_space<vmem>>, %arg4: memref<1x128xf32, #tpu.memory_space<vmem>>, %arg5: memref<64x128xbf16, #tpu.memory_space<vmem>>) attributes {dimension_semantics = [#tpu.dimension_semantics<parallel>], iteration_bounds = array<i64: 2>, scalar_prefetch = 0 : i64, scratch_operands = 0 : i64, tpu.core_type = #tpu.core_type<tc>, window_params = [{transform_indices = @transform_0, window_bounds = array<i64: 64, 256>}, {pipeline_mode = #tpu.pipeline_mode<synchronous>, transform_indices = @transform_1, window_bounds = array<i64: 256, 128>}, {pipeline_mode = #tpu.pipeline_mode<synchronous>, transform_indices = @transform_2, window_bounds = array<i64: 1, 128>}, {pipeline_mode = #tpu.pipeline_mode<synchronous>, transform_indices = @transform_3, window_bounds = array<i64: 1, 128>}, {transform_indices = @transform_4, window_bounds = array<i64: 64, 128>}]} {
    %c0 = arith.constant 0 : index
    %c0_0 = arith.constant 0 : index
    %0 = vector.load %arg1[%c0, %c0_0] : memref<64x256xbf16, #tpu.memory_space<vmem>>, vector<64x256xbf16>
    %c0_1 = arith.constant 0 : index
    %c0_2 = arith.constant 0 : index
    %1 = vector.load %arg2[%c0_1, %c0_2] : memref<256x128xbf16, #tpu.memory_space<vmem>>, vector<256x128xbf16>
    %cst = arith.constant dense<0.000000e+00> : vector<64x128xf32>
    %2 = tpu.matmul %0, %1, %cst {dimension_numbers = #tpu.dot_dimension_numbers<[1], [0], [0], [1], [0, 0, 1, 1], [], []>} : vector<64x256xbf16>, vector<256x128xbf16>, vector<64x128xf32> -> vector<64x128xf32>
    %c0_3 = arith.constant 0 : index
    %c0_4 = arith.constant 0 : index
    %3 = vector.load %arg3[%c0_3, %c0_4] : memref<1x128xf32, #tpu.memory_space<vmem>>, vector<1x128xf32>
    %4 = vector.broadcast %3 : vector<1x128xf32> to vector<64x128xf32>
    %5 = arith.mulf %2, %4 : vector<64x128xf32>
    %c0_5 = arith.constant 0 : index
    %c0_6 = arith.constant 0 : index
    %6 = vector.load %arg4[%c0_5, %c0_6] : memref<1x128xf32, #tpu.memory_space<vmem>>, vector<1x128xf32>
    %7 = vector.broadcast %6 : vector<1x128xf32> to vector<64x128xf32>
    %8 = arith.addf %5, %7 : vector<64x128xf32>
    %cst_7 = arith.constant 0.000000e+00 : f32
    %9 = vector.broadcast %cst_7 : f32 to vector<64x128xf32>
    %10 = arith.maximumf %8, %9 : vector<64x128xf32>
    %11 = arith.truncf %10 : vector<64x128xf32> to vector<64x128xbf16>
    %c0_8 = arith.constant 0 : index
    %c0_9 = arith.constant 0 : index
    %12 = vector.load %arg5[%c0_8, %c0_9] : memref<64x128xbf16, #tpu.memory_space<vmem>>, vector<64x128xbf16>
    tpu.vector_store %arg5[%c0_8, %c0_9], %11 {strides = array<i32>} : memref<64x128xbf16, #tpu.memory_space<vmem>>, vector<64x128xbf16>,
    return
  }
  func.func @transform_0(%arg0: i32) -> (i32, i32) {
    %c0_i32 = arith.constant 0 : i32
    %c0_i32_0 = arith.constant 0 : i32
    return %arg0, %c0_i32 : i32, i32
  }
  func.func @transform_1(%arg0: i32) -> (i32, i32) {
    %c0_i32 = arith.constant 0 : i32
    %c0_i32_0 = arith.constant 0 : i32
    %c0_i32_1 = arith.constant 0 : i32
    return %c0_i32, %c0_i32_0 : i32, i32
  }
  func.func @transform_2(%arg0: i32) -> (i32, i32) {
    %c0_i32 = arith.constant 0 : i32
    %c0_i32_0 = arith.constant 0 : i32
    %c0_i32_1 = arith.constant 0 : i32
    return %c0_i32, %c0_i32_0 : i32, i32
  }
  func.func @transform_3(%arg0: i32) -> (i32, i32) {
    %c0_i32 = arith.constant 0 : i32
    %c0_i32_0 = arith.constant 0 : i32
    %c0_i32_1 = arith.constant 0 : i32
    return %c0_i32, %c0_i32_0 : i32, i32
  }
  func.func @transform_4(%arg0: i32) -> (i32, i32) {
    %c0_i32 = arith.constant 0 : i32
    %c0_i32_0 = arith.constant 0 : i32
    return %arg0, %c0_i32 : i32, i32
  }
}

</mosaic_0001>

<bundles_post_ra>
// kernel: tpu_custom_call.1
= control target key start
LH: loop header
LB: loop body
LE: loop exit
PB: predicated region body
PF: predicated region fallthrough
CT: control target
= control target key end

     0   :  { %9 = vsyncpa [#allocation3], 0  ;;  %s1265_s0 = inlined_call_operand.hbm [shape: bf16[128,256], index: 0, kind: input, shape index: {}]   ;;  %s1266_s1 = inlined_call_operand.hbm [shape: bf16[256,128], index: 1, kind: input, shape index: {}]   ;;  %s1267_s2 = inlined_call_operand.vmem [shape: f32[1,128], index: 2, kind: input, shape index: {}]   ;;  %s1268_s3 = inlined_call_operand.vmem [shape: f32[1,128], index: 3, kind: input, shape index: {}]   ;;  %s1269_s4 = inlined_call_operand.hbm [shape: bf16[128,128], index: 4, kind: output, shape index: {}]  }
   0x1   :  { %11 = vsyncpa [#allocation3 + $0x1], 0 }
   0x2   :  { %12 = vsyncpa [#allocation6], 0 }
   0x3   :  { %13 = vsyncpa [#allocation4], 0 }
   0x4   :  { %15 = vsyncpa [#allocation4 + $0x1], 0  ;;  %s1047_s15 = smov 0   ;;  %s1049_s16 = smov 0  }
   0x5   :  { %s1051_s17 = smov 0   ;;  %s1053_s18 = smov 0  }
   0x6 LB: > { %s1068_s19 = sadd.s32 4294967295, %s1011_s18   ;;  %s651_s20 = sadd.s32 4294967294, %s1011_s18   ;;  %s1011_s18 = sphi %s1053_s18, %s1289_s18   ;;  %s1007_s17 = sphi %s1051_s17, %s1288_s17   ;;  %s1003_s16 = sphi %s1049_s16, %s1287_s16   ;;  %s999_s15 = sphi %s1047_s15, %s1286_s15  }
   0x7   : > { %p41_p0 = scmp.ne.s32.totalorder %s1003_s16, %s999_s15  ;;  %p1270_p1 = scmp.eq.s32.totalorder %s1068_s19, 0 }
   0x8   : > { %p134_p3 = scmp.eq.s32.totalorder %s651_s20, 1  ;;  %p652_p5 = scmp.ge.s32.totalorder %s1011_s18, 1 }
   0x9   : > { %p1077_p4 = por %p1270_p1, %p41_p0  ;;  %p141_p7 = scmp.lt.s32.totalorder %s1011_s18, 3 }
   0xa   : > { %p1082_p6 = por %p134_p3, %p41_p0  ;;  %s1013_s24 = smov [#allocation5]  }
   0xb   : > { %s1273_s21 = scalar_select %p1077_p4, 1, 0 }
   0xc   : > { %s1274_s22 = scalar_select %p1082_p6, 1, 0 }
   0xd   : > { %p1087_p8 = pnand %p652_p5, %p141_p7  ;;  %s153_s25 = sshll.u32 %s1013_s24, 4  ;;  %s1091_s25 = int_to_ptr.vmem [resolvable:$true] %s153_s25 }
   0xe   : > { %s1103_s27 = sadd.s32 1, %s1011_s18   ;;  %s28_s28 = sadd.s32 1, %s1007_s17 }
   0xf   : > { %s1275_s23 = scalar_select %p1087_p8, 1, 0 }
  0x10   : > { %p800_p9 = pneg %p1087_p8  ;;  %s25_s29 = ssub.s32 %s1011_s18, %s1103_s27 }
  0x11   : > { %s883_s6 = scalar_lea.hbm %s1266_s1, 2048 }
  0x12   : > { %p1098_p11 = pnand %p800_p9, %p1270_p1  ;;  %p884_p12 = scmp.ne.s32.totalorder %s1266_s1, %s883_s6 }
  0x13   : > { %p890_p5 = scmp.lt.u32.totalorder %s883_s6, %s1266_s1 }
  0x14   : > { %p885_p13 = pneg %p1098_p11 }
  0x16   : > { %p886_p0 = pnand %p885_p13, %p884_p12 }
  0x18   : > { %p887_p3 = pneg %p886_p0 }
  0x1a   : > { %p892_p7 = pnand %p890_p5, %p887_p3 }
  0x1c   : > { %895 = shalt.err (!%p892_p7)
}
  0x1d   : > { %s896_s11 = scalar_lea.vmem %s1091_s25, 2048  ;;  %p904_p2 = scmp.lt.s32.totalorder %s1091_s25, %s1091_s25 }
  0x1e   : > { %p897_p9 = scmp.ne.s32.totalorder %s1091_s25, %s896_s11  ;;  %p905_p6 = scmp.lt.s32.totalorder %s896_s11, %s896_s11 }
  0x20   : > { %p899_p10 = pnand %p897_p9, %p885_p13  ;;  %p906_p4 = por %p905_p6, %p904_p2 }
  0x22   : > { %p900_p1 = pneg %p899_p10 }
  0x24   : > { %p907_p8 = pnand %p906_p4, %p900_p1 }
  0x26   : > { %910 = shalt.err (!%p907_p8)
}
  0x27   : > { %s1014_s12 = smov 64   ;;  %s1015_s13 = smov 4  }
  0x28   : > { %803 = dma.hbm_to_vmem [thread:$0]  (!%p1098_p11), %s1266_s1, 2048, %s1091_s25, [#allocation6], %s1014_s12, %s1014_s12, %s1015_s13  }
  0x29   : > { %p26_p2 = scmp.eq.s32.totalorder %s25_s29, 0  ;;  %p35_p1 = scmp.ne.s32.totalorder %s1007_s17, %s1003_s16 }
  0x2a   : > { %p36_p4 = scmp.eq.s32.totalorder %s1011_s18, 0  ;;  %p813_p6 = scmp.lt.s32.totalorder %s1011_s18, 2 }
  0x2b   : > { %s1134_s24 = scalar_select %p26_p2, %s1007_s17, %s28_s28  }
  0x2c   : > { %p37_p8 = por %p36_p4, %p35_p1  ;;  %p1277_p10 = scmp.eq.s32.totalorder %s1068_s19, 1 }
  0x2d   : > { %s173_s5 = sand.u32 1, %s1007_s17   ;;  %s703_s6 = sshll.u32 %s1011_s18, 10 }
  0x2e   : > { %p1138_p12 = por %p1277_p10, %p35_p1  ;;  %s655_s7 = sshll.u32 %s173_s5, 6 }
  0x2f   : > { %s1147_s9 = scalar_lea.hbm %s1265_s0, %s703_s6  ;;  %s177_s25 = scalar_lea.vmem [#allocation2], %s655_s7 }
  0x30   : > { %s185_s28 = sshll.u32 %s177_s25, 4  ;;  %p1149_p11 = pnand %p813_p6, %p37_p8  ;;  %s1153_s28 = int_to_ptr.vmem [resolvable:$true] %s185_s28 }
  0x31   : > { %s1155_s10 = scalar_lea.sflag [#allocation3], %s173_s5  ;;  %s911_s11 = scalar_lea.hbm %s1147_s9, 1024 }
  0x32   : > { %p912_p13 = scmp.ne.s32.totalorder %s1147_s9, %s911_s11  ;;  %p913_p0 = pneg %p1149_p11 }
  0x33   : > { %s916_s14 = scalar_lea.hbm %s1265_s0, 2048  ;;  %p917_p7 = scmp.lt.u32.totalorder %s1147_s9, %s1265_s0 }
  0x34   : > { %p914_p3 = pnand %p913_p0, %p912_p13  ;;  %p918_p9 = scmp.lt.u32.totalorder %s916_s14, %s911_s11 }
  0x35   : > { %p920_p1 = scmp.lt.u32.totalorder %s911_s11, %s1147_s9 }
  0x36   : > { %p915_p5 = pneg %p914_p3  ;;  %p919_p2 = por %p918_p9, %p917_p7 }
  0x38   : > { %p921_p4 = por %p920_p1, %p919_p2 }
  0x3a   : > { %p922_p6 = pnand %p921_p4, %p915_p5 }
  0x3c   : > { %925 = shalt.err (!%p922_p6)
}
  0x3d   : > { %s926_s5 = scalar_lea.vmem %s1153_s28, 1024  ;;  %s1016_s7 = smov [#allocation2]  }
  0x3e   : > { %p927_p8 = scmp.ne.s32.totalorder %s1153_s28, %s926_s5  ;;  %s931_s26 = sshll.u32 %s1016_s7, 4  ;;  %s932_s26 = int_to_ptr.vmem [resolvable:$false] %s931_s26 }
  0x3f   : > { %s933_s8 = scalar_lea.vmem %s932_s26, 2048  ;;  %p934_p3 = scmp.lt.s32.totalorder %s1153_s28, %s932_s26 }
  0x40   : > { %p929_p10 = pnand %p927_p8, %p913_p0  ;;  %p935_p7 = scmp.lt.s32.totalorder %s933_s8, %s926_s5 }
  0x42   : > { %p930_p13 = pneg %p929_p10  ;;  %p936_p9 = por %p935_p7, %p934_p3 }
  0x44   : > { %p937_p2 = pnand %p936_p9, %p930_p13 }
  0x46   : > { %940 = shalt.err (!%p937_p2)
}
  0x47   : > { %s1017_s25 = smov 128   ;;  %s1018_s11 = smov 8  }
  0x48   : > { %807 = dma.hbm_to_vmem [thread:$0]  (!%p1149_p11), %s1147_s9, 1024, %s1153_s28, %s1155_s10, %s1017_s25, %s1017_s25, %s1018_s11  }
  0x49   : > { %p1280_p0 = scmp.ne.s32.totalorder %s1275_s23, 0 }
  0x4a   : > { %s1186_s12 = sand.u32 (!%p1280_p0), 1, %s1003_s16   ;;  %p1281_p5 = scmp.ne.s32.totalorder (!%p1280_p0), %s1273_s21, 0 }
  0x4b   : > { %197 = sbr.rel (%p1280_p0) target bundleno = 368 (0x170), region = 36  ;;  %s660_s13 = sshll.u32 (!%p1280_p0), %s1186_s12, 6 }
  0x4c   : > { %s200_s14 = scalar_lea.sflag (!%p1280_p0), [#allocation3], %s1186_s12  ;;  %s1190_s20 = scalar_lea.vmem (!%p1280_p0), [#allocation2], %s660_s13 }
  0x52   : > { %986 = dma.done.wait (%p1281_p5), %s200_s14, 1024  }
  0x53   : > { %988 = vsyncadd (%p1281_p5), %s200_s14, 4294966272  ;;  %p1282_p11 = scmp.eq.s32.totalorder %s1068_s19, 0 }
  0x55   : > { %990 = dma.done.wait (%p1282_p11), [#allocation6], 2048   ;;  %p1283_p1 = pmov %p1282_p11 }
  0x56   : > { %v855_v0 = vld [vmem:[#allocation5 + $0x40] sm:$0xff]   ;;  %v857_v2 = vld [vmem:[#allocation5 + $0x48] sm:$0xff]   ;;  %v859_v4 = vld [vmem:[#allocation5 + $0x50] sm:$0xff]   ;;  %s662_s29 = sshll.u32 %s1186_s12, 5  ;;  %s712_s5 = sshll.u32 %s1068_s19, 9 }
  0x57   : > { %992 = vsyncadd (%p1283_p1), [#allocation6], 4294965248  ;;  %v856_v1 = vld [vmem:[#allocation5] sm:$0xff]   ;;  %736 = vmatprep.subr.bf16.mxu0 %v855_v0  ;;  %776 = vmatprep.subr.bf16.mxu1 %v855_v0  ;;  %v858_v3 = vld [vmem:[#allocation5 + $0x8] sm:$0xff]   ;;  %s231_s10 = scalar_lea.vmem [#allocation7], %s662_s29  ;;  %s1221_s8 = scalar_lea.hbm %s1269_s4, %s712_s5 }
  0x58   : > { %737 = vmatpush3.bf16.msra.mxu0 %v856_v1  ;;  %784 = vmatpush3.bf16.msra.mxu1 %v856_v1  ;;  %v860_v5 = vld [vmem:[#allocation5 + $0x10] sm:$0xff]   ;;  %v861_v6 = vld [vmem:[#allocation5 + $0x58] sm:$0xff]   ;;  %v863_v8 = vld [vmem:[#allocation5 + $0x60] sm:$0xff]   ;;  %s568_s6 = sshll.u32 %s231_s10, 4  ;;  %s555_s25 = scalar_lea.sflag [#allocation4], %s1186_s12  ;;  %s1216_s6 = int_to_ptr.vmem [resolvable:$true] %s568_s6 }
  0x59   : > { %738 = vmatprep.subr.bf16.mxu0 %v857_v2  ;;  %777 = vmatprep.subr.bf16.mxu1 %v857_v2  ;;  %v862_v7 = vld [vmem:[#allocation5 + $0x18] sm:$0xff]   ;;  %v864_v9 = vld [vmem:[#allocation5 + $0x20] sm:$0xff]   ;;  %v865_v10 = vld [vmem:[#allocation5 + $0x68] sm:$0xff]   ;;  %s941_s19 = scalar_lea.vmem %s1216_s6, 512  ;;  %s1019_s11 = smov [#allocation7]  }
  0x5a   : > { %v873_v11 = vld [vmem:[%s1190_s20 + $0x4] ss:$8 sps:$4 sm:$0xff]   ;;  %v867_v14 = vld [vmem:[#allocation5 + $0x70] sm:$0xff]   ;;  %v869_v16 = vld [vmem:[#allocation5 + $0x78] sm:$0xff]   ;;  %p942_p4 = scmp.ne.s32.totalorder %s1216_s6, %s941_s19  ;;  %s945_s13 = sshll.u32 %s1019_s11, 4  ;;  %s946_s13 = int_to_ptr.vmem [resolvable:$false] %s945_s13 }
  0x5b   : > { %v876_v12 = vld [vmem:[%s1190_s20 + $0x24] ss:$8 sps:$4 sm:$0xff]   ;;  %443 = vmatprep.mubr.bf16.mxu0 %v873_v11  ;;  %v868_v15 = vld [vmem:[#allocation5 + $0x30] sm:$0xff]   ;;  %v870_v17 = vld [vmem:[#allocation5 + $0x38] sm:$0xff]   ;;  %s947_s14 = scalar_lea.vmem %s946_s13, 1024  ;;  %p948_p10 = scmp.lt.s32.totalorder %s1216_s6, %s946_s13 }
  0x5c   : > { %739 = vmatpush3.bf16.msra.mxu0 %v858_v3  ;;  %785 = vmatpush3.bf16.msra.mxu1 %v858_v3  ;;  %v866_v13 = vld [vmem:[#allocation5 + $0x28] sm:$0xff]   ;;  %v877_v20 = vld [vmem:[%s1190_s20 + $0x14] ss:$8 sps:$4 sm:$0xff]   ;;  %v881_v22 = vld [vmem:[%s1190_s20 + $0x10] ss:$8 sps:$4 sm:$0xff]   ;;  %p943_p6 = pnand %p942_p4, %p1138_p12  ;;  %p949_p13 = scmp.lt.s32.totalorder %s947_s14, %s941_s19 }
  0x5d   : > { %740 = vmatprep.subr.bf16.mxu0 %v859_v4  ;;  %778 = vmatprep.subr.bf16.mxu1 %v859_v4  ;;  %v871_v18 = vld [vmem:[%s1190_s20] ss:$8 sps:$4 sm:$0xff]   ;;  %v879_v21 = vld [vmem:[%s1190_s20 + $0x34] ss:$8 sps:$4 sm:$0xff]   ;;  %v882_v23 = vld [vmem:[%s1190_s20 + $0x30] ss:$8 sps:$4 sm:$0xff]  }
  0x5e   : > { %459 = vmatprep.mubr.bf16.mxu1 %v876_v12  ;;  %v874_v19 = vld [vmem:[%s1190_s20 + $0x20] ss:$8 sps:$4 sm:$0xff]   ;;  %p944_p8 = pneg %p943_p6  ;;  %p950_p3 = por %p949_p13, %p948_p10 }
  0x5f   : > { %v687_v27 = vld [vmem:[%s1267_s2] ss:$0 sm:$0xff] }
  0x60   : > { %741 = vmatpush3.bf16.msra.mxu0 %v860_v5  ;;  %786 = vmatpush3.bf16.msra.mxu1 %v860_v5  ;;  %v688_v33 = vld [vmem:[%s1268_s3] ss:$0 sm:$0xff]  ;;  %p951_p7 = pnand %p950_p3, %p944_p8 }
  0x61   : > { %742 = vmatprep.subr.bf16.mxu0 %v861_v6  ;;  %779 = vmatprep.subr.bf16.mxu1 %v861_v6 }
  0x64   : > { %743 = vmatpush3.bf16.msra.mxu0 %v862_v7  ;;  %787 = vmatpush3.bf16.msra.mxu1 %v862_v7 }
  0x65   : > { %744 = vmatprep.subr.bf16.mxu0 %v863_v8  ;;  %780 = vmatprep.subr.bf16.mxu1 %v863_v8 }
  0x68   : > { %745 = vmatpush3.bf16.msra.mxu0 %v864_v9  ;;  %788 = vmatpush3.bf16.msra.mxu1 %v864_v9 }
  0x69   : > { %746 = vmatprep.subr.bf16.mxu0 %v865_v10  ;;  %781 = vmatprep.subr.bf16.mxu1 %v865_v10 }
  0x6c   : > { %747 = vmatpush3.bf16.msra.mxu0 %v866_v13  ;;  %789 = vmatpush3.bf16.msra.mxu1 %v866_v13 }
  0x6d   : > { %748 = vmatprep.subr.bf16.mxu0 %v867_v14  ;;  %782 = vmatprep.subr.bf16.mxu1 %v867_v14 }
  0x70   : > { %749 = vmatpush3.bf16.msra.mxu0 %v868_v15  ;;  %790 = vmatpush3.bf16.msra.mxu1 %v868_v15 }
  0x71   : > { %750 = vmatprep.subr.bf16.mxu0 %v869_v16  ;;  %783 = vmatprep.subr.bf16.mxu1 %v869_v16 }
  0x74   : > { %751 = vmatpush3.bf16.msra.mxu0 %v870_v17  ;;  %791 = vmatpush3.bf16.msra.mxu1 %v870_v17 }
  0x77   : > { %444 = vmatmul.mubr.bf16.vlgmr.msra.gmra.mrb[0].mxu0 %v871_v18  ;;  %460 = vmatmul.mubr.bf16.vlgmr.msra.gmra.mrb[0].mxu1 %v874_v19 }
  0x78   : > { %451 = vmatprep.mubr.bf16.mxu0 %v877_v20  ;;  %467 = vmatprep.mubr.bf16.mxu1 %v879_v21 }
  0x7f   : > { %452 = vmatmul.mubr.bf16.gmra.mrb[4].mxu0 %v881_v22  ;;  %468 = vmatmul.mubr.bf16.gmra.mrb[4].mxu1 %v882_v23 }
 0x14a   : > { %v752_v24 = vpop.f32.mrb[0].mxu0  ;;  %v764_v25 = vpop.f32.mrb[0].mxu1 }
 0x14b   : > { %v753_v26 = vpop.f32.mrb[1].mxu0  ;;  %v765_v28 = vpop.f32.mrb[1].mxu1 }
 0x14c   : > { %v754_v29 = vadd.f32 %v753_v26, %v752_v24  ;;  %v766_v30 = vadd.f32 %v765_v28, %v764_v25  ;;  %v755_v31 = vpop.f32.mrb[2].mxu0  ;;  %v767_v32 = vpop.f32.mrb[2].mxu1 }
 0x14d   : > { %v756_v34 = vpop.f32.mrb[3].mxu0  ;;  %v768_v35 = vpop.f32.mrb[3].mxu1 }
 0x14e   : > { %v483_v36 = vmul.f32 %v754_v29, %v687_v27  ;;  %v487_v37 = vmul.f32 %v766_v30, %v687_v27  ;;  %v757_v38 = vadd.f32 %v756_v34, %v755_v31  ;;  %v769_v39 = vadd.f32 %v768_v35, %v767_v32 }
 0x150   : > { %v498_v40 = vadd.f32 %v688_v33, %v483_v36  ;;  %v502_v41 = vadd.f32 %v688_v33, %v487_v37  ;;  %v484_v42 = vmul.f32 %v757_v38, %v687_v27  ;;  %v488_v43 = vmul.f32 %v769_v39, %v687_v27 }
 0x152   : > { %v499_v44 = vadd.f32 %v688_v33, %v484_v42  ;;  %v503_v45 = vadd.f32 %v688_v33, %v488_v43  ;;  %v758_v46 = vpop.f32.mrb[4].mxu0  ;;  %v770_v47 = vpop.f32.mrb[4].mxu1  ;;  %v506_v48 = vmax.f32 %v498_v40, 0.0  ;;  %v510_v49 = vmax.f32 %v502_v41, 0.0 }
 0x153   : > { %v759_v50 = vpop.f32.mrb[5].mxu0  ;;  %v771_v51 = vpop.f32.mrb[5].mxu1 }
 0x154   : > { %v507_v52 = vmax.f32 %v499_v44, 0.0  ;;  %v511_v53 = vmax.f32 %v503_v45, 0.0  ;;  %v760_v54 = vadd.f32 %v759_v50, %v758_v46  ;;  %v772_v55 = vadd.f32 %v771_v51, %v770_v47  ;;  %v761_v56 = vpop.f32.mrb[6].mxu0  ;;  %v773_v57 = vpop.f32.mrb[6].mxu1 }
 0x155   : > { %v762_v58 = vpop.f32.mrb[7].mxu0  ;;  %v774_v59 = vpop.f32.mrb[7].mxu1 }
 0x156   : > { %v716_v60 = vpack.c.bf16 %v507_v52, %v506_v48  ;;  %v726_v61 = vpack.c.bf16 %v511_v53, %v510_v49  ;;  %v485_v62 = vmul.f32 %v760_v54, %v687_v27  ;;  %v489_v63 = vmul.f32 %v772_v55, %v687_v27 }
 0x157   : > { %v763_v0 = vadd.f32 %v762_v58, %v761_v56  ;;  %v775_v1 = vadd.f32 %v774_v59, %v773_v57 }
 0x158   : > { %717 = vst [vmem:[%s231_s10] sm:$0xff] %v716_v60   ;;  %734 = vst [vmem:[%s231_s10 + $0x10] sm:$0xff] %v726_v61   ;;  %v500_v2 = vadd.f32 %v688_v33, %v485_v62  ;;  %v504_v3 = vadd.f32 %v688_v33, %v489_v63 }
 0x159   : > { %v486_v4 = vmul.f32 %v763_v0, %v687_v27  ;;  %v490_v5 = vmul.f32 %v775_v1, %v687_v27 }
 0x15a   : > { %v508_v8 = vmax.f32 %v500_v2, 0.0  ;;  %v512_v9 = vmax.f32 %v504_v3, 0.0 }
 0x15b   : > { %v501_v6 = vadd.f32 %v688_v33, %v486_v4  ;;  %v505_v7 = vadd.f32 %v688_v33, %v490_v5 }
 0x15d   : > { %v509_v10 = vmax.f32 %v501_v6, 0.0  ;;  %v513_v11 = vmax.f32 %v505_v7, 0.0 }
 0x15f   : > { %v721_v12 = vpack.c.bf16 %v509_v10, %v508_v8  ;;  %v731_v13 = vpack.c.bf16 %v513_v11, %v512_v9 }
 0x161   : > { %733 = vst [vmem:[%s231_s10 + $0x8] sm:$0xff] %v721_v12   ;;  %735 = vst [vmem:[%s231_s10 + $0x18] sm:$0xff] %v731_v13  }
 0x162   : > { %954 = shalt.err (!%p951_p7)
}
 0x163   : > { %s955_s20 = scalar_lea.hbm %s1221_s8, 512  ;;  %s959_s9 = scalar_lea.hbm %s1269_s4, 1024 }
 0x164   : > { %p956_p9 = scmp.ne.s32.totalorder %s1221_s8, %s955_s20  ;;  %p960_p5 = scmp.lt.u32.totalorder %s1221_s8, %s1269_s4 }
 0x165   : > { %p961_p11 = scmp.lt.u32.totalorder %s959_s9, %s955_s20  ;;  %p963_p4 = scmp.lt.u32.totalorder %s955_s20, %s1221_s8 }
 0x166   : > { %p957_p2 = pnand %p956_p9, %p1138_p12 }
 0x167   : > { %p962_p1 = por %p961_p11, %p960_p5 }
 0x168   : > { %p958_p0 = pneg %p957_p2 }
 0x169   : > { %p964_p6 = por %p963_p4, %p962_p1 }
 0x16b   : > { %p965_p8 = pnand %p964_p6, %p958_p0 }
 0x16d   : > { %968 = shalt.err (!%p965_p8)
}
 0x16e   : > { %s1020_s10 = smov 64   ;;  %s1021_s5 = smov 4  }
 0x16f   : > { %798 = dma.vmem_to_hbm [thread:$0]  (%p1138_p12), %s1216_s6, 512, %s1221_s8, %s555_s25, %s1020_s10, %s1020_s10, %s1021_s5  }
 0x170 PF: > { %s583_s7 = sand.u32 1, %s999_s15   ;;  %p1284_p10 = scmp.ne.s32.totalorder %s1274_s22, 0 }
 0x171   : > { %p1285_p13 = scmp.ge.s32.totalorder %s1011_s18, 2  ;;  %s584_s26 = scalar_lea.sflag [#allocation4], %s583_s7 }
 0x173   : > { %p809_p3 = pnand %p1285_p13, %p1284_p10 }
 0x175   : > { %994 = dma.done.wait (!%p809_p3), %s584_s26, 512  }
 0x176   : > { %996 = vsyncadd (!%p809_p3), %s584_s26, 4294966784  ;;  %p18_p7 = scmp.ge.s32.totalorder %s1103_s27, 4   ;;  %s1286_s15 = smov %s1003_s16 }
 0x177   : > { %s1287_s16 = smov %s1007_s17  ;;  %s1288_s17 = smov %s1134_s24 }
 0x178   : > { %s1289_s18 = smov %s1103_s27  ;;  %20 = sbr.rel (!%p18_p7) target bundleno = 6 (0x6), region = 85 }
 0x17f   :  { %589 = vsyncpa [#allocation3], 1 }
 0x180   :  { %591 = vsyncpa [#allocation3 + $0x1], 1 }
 0x181   :  { %592 = vsyncpa [#allocation6], 1 }
 0x182   :  { %593 = vsyncpa [#allocation4], 1 }
 0x183   :  { %595 = vsyncpa [#allocation4 + $0x1], 1 }

</bundles_post_ra>
